<compile_context>
chip_gen: v5e
topology: v5e:2x2
jax: 0.10.0
libtpu: 0.0.40
codegen_flags: <defaults>
</compile_context>

<pallas_src>
import functools

import jax
import jax.numpy as jnp
from jax.experimental import pallas as pl
from jax.experimental.pallas import tpu as pltpu


_LANE_CANDIDATES = (1024, 512, 256, 128)   # lane-dense widths (multiples of 128)
_TARGET_BLOCK_BYTES = 8 << 20              # ~8 MiB per tile (good on v5e/v6e/v7x)
_MIN_PALLAS_BYTES = 1 << 20                # below this, plain fused jnp wins
_VMEM_LIMIT_BYTES = 48 << 20               # 4 x 8 MiB pipeline buffers + headroom


def _ptmodule_kernel(x_ref, o_ref):
    # ((x + 10) * 2)^2 == (x + 10)^2 * 4  (one fewer dependent VALU op;
    # power-of-two scaling is exact in f32, so results are bit-identical
    # away from the overflow boundary).
    v = x_ref[...] + 10.0
    o_ref[...] = (v * v) * 4.0


def _ptmodule_jnp(x):
    v = x + 10.0
    return (v * v) * 4.0


def _pick_lane(total):
    for lane in _LANE_CANDIDATES:
        if total % lane == 0:
            return lane
    return None


@functools.partial(jax.jit, static_argnames=("force_pallas", "block_bytes"))
def ptmodule_forward(x, *, force_pallas=False, block_bytes=_TARGET_BLOCK_BYTES):
    """Pallas implementation of PtModule.forward for a float tensor."""
    orig_shape = x.shape
    total = x.size
    itemsize = x.dtype.itemsize
    total_bytes = total * itemsize

    lane = _pick_lane(total)
    tiny = (total_bytes < _MIN_PALLAS_BYTES) and not force_pallas
    if lane is None or tiny:
        # Misaligned (rare) or tiny inputs: a single fused XLA elementwise op
        # is already at the HBM roofline with zero extra copies / launch cost.
        return _ptmodule_jnp(x)

    rows = total // lane
    x2d = x.reshape(rows, lane)        # contiguous view; free under jit

    # ~block_bytes tiles, rounded down to a multiple of 8 sublanes.
    tm = max(8, (block_bytes // (lane * itemsize)) // 8 * 8)
    tm = min(tm, rows)
    # For anything beyond a couple of MiB, keep >= ~4 grid steps so the DMA
    # pipeline overlaps and v7x can shard the axis across both TensorCores.
    if total_bytes > (2 << 20):
        tm = min(tm, max(8, (rows // 4) // 8 * 8))

    grid = (pl.cdiv(rows, tm),)        # partial last block OK: writes masked

    out2d = pl.pallas_call(
        _ptmodule_kernel,
        out_shape=jax.ShapeDtypeStruct((rows, lane), x2d.dtype),
        grid=grid,
        in_specs=[pl.BlockSpec((tm, lane), lambda i: (i, 0))],
        out_specs=pl.BlockSpec((tm, lane), lambda i: (i, 0)),
        compiler_params=pltpu.CompilerParams(
            dimension_semantics=("parallel",),
            vmem_limit_bytes=_VMEM_LIMIT_BYTES,
        ),
        cost_estimate=pl.CostEstimate(
            flops=3 * total,
            transcendentals=0,
            bytes_accessed=2 * total_bytes,
        ),
    )(x2d)

    return out2d.reshape(orig_shape)


if __name__ == "__main__":
    key = jax.random.PRNGKey(0)

    # Demo input at the module's natural small NCHW shape.
    x = jax.random.normal(key, (2, 4, 16, 16), dtype=jnp.float32)
    out = ptmodule_forward(x, force_pallas=True)   # exercise the Pallas kernel
    jax.block_until_ready(out)

    ref = ((x + 10.0) * 2.0) ** 2
    assert out.shape == x.shape
    assert out.dtype == x.dtype
    assert jnp.allclose(out, ref, atol=1e-5, rtol=1e-5)

    # Second small check: multi-step grid with a partial (masked) last block.
    x2 = jax.random.normal(jax.random.PRNGKey(1), (2, 4, 40, 40), dtype=jnp.float32)
    out2 = ptmodule_forward(x2, force_pallas=True, block_bytes=16 * 1024)
    jax.block_until_ready(out2)
    ref2 = ((x2 + 10.0) * 2.0) ** 2
    assert jnp.allclose(out2, ref2, atol=1e-5, rtol=1e-5)

    print("KERNEL_OK")
</pallas_src>

<mosaic_0001>
module attributes {stable_mosaic.version = 11 : i64} {
  func.func @_ptmodule_kernel(%arg0: i32, %arg1: memref<2x1024xf32, #tpu.memory_space<vmem>>, %arg2: memref<2x1024xf32, #tpu.memory_space<vmem>>) attributes {dimension_semantics = [#tpu.dimension_semantics<parallel>], iteration_bounds = array<i64: 1>, scalar_prefetch = 0 : i64, scratch_operands = 0 : i64, tpu.core_type = #tpu.core_type<tc>, window_params = [{transform_indices = @transform_0, window_bounds = array<i64: 2, 1024>}, {transform_indices = @transform_1, window_bounds = array<i64: 2, 1024>}]} {
    %c0 = arith.constant 0 : index
    %c0_0 = arith.constant 0 : index
    %0 = vector.load %arg1[%c0, %c0_0] : memref<2x1024xf32, #tpu.memory_space<vmem>>, vector<2x1024xf32>
    %cst = arith.constant 1.000000e+01 : f32
    %1 = vector.broadcast %cst : f32 to vector<2x1024xf32>
    %2 = arith.addf %0, %1 : vector<2x1024xf32>
    %3 = arith.mulf %2, %2 : vector<2x1024xf32>
    %cst_1 = arith.constant 4.000000e+00 : f32
    %4 = vector.broadcast %cst_1 : f32 to vector<2x1024xf32>
    %5 = arith.mulf %3, %4 : vector<2x1024xf32>
    %c0_2 = arith.constant 0 : index
    %c0_3 = arith.constant 0 : index
    %6 = vector.load %arg2[%c0_2, %c0_3] : memref<2x1024xf32, #tpu.memory_space<vmem>>, vector<2x1024xf32>
    tpu.vector_store %arg2[%c0_2, %c0_3], %5 {strides = array<i32>} : memref<2x1024xf32, #tpu.memory_space<vmem>>, vector<2x1024xf32>,
    return
  }
  func.func @transform_0(%arg0: i32) -> (i32, i32) {
    %c0_i32 = arith.constant 0 : i32
    %c0_i32_0 = arith.constant 0 : i32
    return %arg0, %c0_i32 : i32, i32
  }
  func.func @transform_1(%arg0: i32) -> (i32, i32) {
    %c0_i32 = arith.constant 0 : i32
    %c0_i32_0 = arith.constant 0 : i32
    return %arg0, %c0_i32 : i32, i32
  }
}

</mosaic_0001>

<bundles_post_ra>
// kernel: ptmodule_forward.1
= control target key start
LH: loop header
LB: loop body
LE: loop exit
PB: predicated region body
PF: predicated region fallthrough
CT: control target
= control target key end

     0   :  { %s44_s0 = inlined_call_operand.vmem [shape: f32[2,1024], index: 0, kind: input, shape index: {}]   ;;  %s45_s1 = inlined_call_operand.vmem [shape: f32[2,1024], index: 1, kind: output, shape index: {}]  }
   0x1   :  { %v8_v0 = vld [vmem:[%s44_s0] sm:$0xff]  ;;  %v9_v1 = vld [vmem:[%s44_s0 + $0x8] sm:$0xff] }
   0x2   :  { %v10_v2 = vadd.f32 10.0, %v8_v0  ;;  %v11_v3 = vadd.f32 10.0, %v9_v1 }
   0x4   :  { %v12_v4 = vmul.f32 %v10_v2, %v10_v2  ;;  %v13_v5 = vmul.f32 %v11_v3, %v11_v3 }
   0x6   :  { %v14_v6 = vmul.f32 4.0, %v12_v4  ;;  %v15_v7 = vmul.f32 4.0, %v13_v5 }
   0x8   :  { %16 = vst [vmem:[%s45_s1] sm:$0xff] %v14_v6 }
   0x9   :  { %17 = vst [vmem:[%s45_s1 + $0x8] sm:$0xff] %v15_v7 }

</bundles_post_ra>
